<compile_context>
chip_gen: v7x
topology: tpu7x:2x2x1
jax: 0.10.0
libtpu: 0.0.40
codegen_flags: <defaults>
</compile_context>

<pallas_src>
import jax
import jax.numpy as jnp
from jax.experimental import pallas as pl
from jax.experimental.pallas import tpu as pltpu


def _fitter_kernel(x_ref, w1_ref, b1_ref, w2_ref, b2_ref, o_ref):
    # x_ref:  (2, TN)  input tile, batch on the lane axis
    # w1_ref: (Hp, 2)  0.5 * fc1.weight (PyTorch layout, H padded to mult of 8)
    # b1_ref: (Hp, 1)  0.5 * fc1.bias as a column vector
    # b2_ref: (1, 1)   fc2.bias + 0.5*sum(fc2.weight), scalar in SMEM
    # w2_ref: (Hp, 1)  0.5 * fc2.weight as a column vector
    # o_ref:  (1, TN)  lane-dense output tile
    x = x_ref[...].astype(jnp.float32)      # cast-after-load: bf16 x is allowed
    x0 = x[0:1, :]                          # (1, TN)
    x1 = x[1:2, :]                          # (1, TN)
    w1c0 = w1_ref[:, 0:1]                   # (Hp, 1)
    w1c1 = w1_ref[:, 1:2]                   # (Hp, 1)

    # fc1: K=2 contraction as VPU broadcast-FMAs (no MXU push/pop).
    h = w1c0 * x0 + w1c1 * x1 + b1_ref[...]                 # (Hp, TN)

    # sigmoid(a) = 0.5*tanh(a/2) + 0.5 with the 0.5s folded into the weights:
    # one EUP transcendental per element instead of exp + divide.
    t = jnp.tanh(h)                                          # (Hp, TN)

    # fc2: VPU multiply + XLU sublane reduce over Hp + scalar bias (SMEM).
    z = jnp.sum(t * w2_ref[...], axis=0, keepdims=True) + b2_ref[0, 0]
    o_ref[...] = z.astype(o_ref.dtype)


def _pick_tile_n(n, h_pad, *, vmem_budget_bytes=24 << 20, cap=65536):
    """Batch (lane) tile size: VMEM-aware, multiple of 128, divides n.

    Budget ~3*Hp*tile*4 B of live (Hp, tile) f32 temporaries plus
    double-buffered x/out tiles against a 24 MiB scoped-VMEM budget that is
    safe across v5e/v6e/v7x.  Prefers >=4 grid steps (2 per v7x TensorCore)
    while tiles stay >= 8192 lanes, and always >=2 steps when possible so the
    BlockSpec pipeline overlaps the x DMA with compute.
    """
    if n % 128 != 0:
        return n  # small / ragged batch: single full-extent block
    per_col_bytes = 12 * h_pad + 24
    vmem_cap = max(128, (vmem_budget_bytes // per_col_bytes) // 128 * 128)
    t = min(cap, vmem_cap, n)
    t -= t % 128
    while n % t != 0:
        t -= 128
    while (n // t < 4 and t // 2 >= 8192
           and (t // 2) % 128 == 0 and n % (t // 2) == 0):
        t //= 2
    while (n // t < 2 and t // 2 >= 128
           and (t // 2) % 128 == 0 and n % (t // 2) == 0):
        t //= 2
    return t


def _prep_params(w1, b1, w2, b2):
    """Fold the tanh-sigmoid rescaling into the weights and pad H to 8."""
    H = w1.shape[0]
    Hp = (H + 7) // 8 * 8
    w1f = 0.5 * w1.astype(jnp.float32)                       # (H, 2)
    b1f = 0.5 * b1.astype(jnp.float32).reshape(H, 1)         # (H, 1)
    w2f = 0.5 * w2.astype(jnp.float32).reshape(H, 1)         # (H, 1)
    b2f = (b2.astype(jnp.float32).reshape(())
           + 0.5 * jnp.sum(w2.astype(jnp.float32))).reshape(1, 1)
    if Hp != H:
        pad = Hp - H  # zero rows contribute tanh(0)*0 = 0 to the reduction
        w1f = jnp.pad(w1f, ((0, pad), (0, 0)))
        b1f = jnp.pad(b1f, ((0, pad), (0, 0)))
        w2f = jnp.pad(w2f, ((0, pad), (0, 0)))
    return w1f, b1f, w2f, b2f, Hp


def fitter_forward_soa(x_t, w1, b1, w2, b2, *, tile_n=None):
    """Forward pass with x already in SoA (2, N) layout (no HBM transpose).

    x_t: (2, N) f32 or bf16;  w1: (H, 2);  b1: (H,);  w2: (1, H);  b2: (1,)
    Returns (N, 1) float32.
    """
    assert x_t.shape[0] == 2
    N = x_t.shape[1]
    w1f, b1f, w2f, b2f, Hp = _prep_params(w1, b1, w2, b2)

    if tile_n is None:
        tile_n = _pick_tile_n(N, Hp)
    assert N % tile_n == 0, "tile_n must divide N"

    grid = (N // tile_n,)
    out = pl.pallas_call(
        _fitter_kernel,
        out_shape=jax.ShapeDtypeStruct((1, N), jnp.float32),
        grid=grid,
        in_specs=[
            pl.BlockSpec((2, tile_n), lambda i: (0, i)),        # x tile (lane-dense)
            pl.BlockSpec((Hp, 2), lambda i: (0, 0)),            # w1 (VMEM-resident)
            pl.BlockSpec((Hp, 1), lambda i: (0, 0)),            # b1 (resident)
            pl.BlockSpec((Hp, 1), lambda i: (0, 0)),            # w2 (resident)
            pl.BlockSpec(memory_space=pltpu.MemorySpace.SMEM),  # b2 scalar in SMEM
        ],
        out_specs=pl.BlockSpec((1, tile_n), lambda i: (0, i)),  # lane-dense output
        compiler_params=pltpu.CompilerParams(
            # TODO(synk): switch to pltpu.CORE_PARALLEL if a v7x profile shows
            # one TensorCore idle under plain "parallel".
            dimension_semantics=("parallel",),
            # >= the 24 MiB tile budget; raises v5e's 16 MiB scoped default and
            # stays under v7x's 64 MiB physical VMEM.
            vmem_limit_bytes=32 << 20,
        ),
    )(x_t, w1f, b1f, w2f, b2f)
    return out.reshape(N, 1)


def fitter_forward(x, w1, b1, w2, b2, *, tile_n=None):
    """AoS convenience wrapper: x is (N, 2) as in the PyTorch module.

    Pays one (N,2)->(2,N) HBM transpose per call; training loops that reuse
    the same collocation points should transpose once and call
    `fitter_forward_soa` directly.
    """
    return fitter_forward_soa(x.T, w1, b1, w2, b2, tile_n=tile_n)


def init_fitter_params(key, num_hidden_nodes):
    """Deterministic init matching the PyTorch Linear layouts.
    fc1: weight (H, 2), bias (H,);  fc2: weight (1, H), bias (1,)."""
    H = num_hidden_nodes
    k1, k2, k3, k4 = jax.random.split(key, 4)
    bound1 = 1.0 / jnp.sqrt(2.0)
    bound2 = 1.0 / jnp.sqrt(float(H))
    w1 = jax.random.uniform(k1, (H, 2), jnp.float32, -bound1, bound1)
    b1 = jax.random.uniform(k2, (H,), jnp.float32, -bound1, bound1)
    w2 = jax.random.uniform(k3, (1, H), jnp.float32, -bound2, bound2)
    b2 = jax.random.uniform(k4, (1,), jnp.float32, -bound2, bound2)
    return w1, b1, w2, b2


if __name__ == "__main__":
    key = jax.random.PRNGKey(0)
    kx, kp = jax.random.split(key)

    N = 256          # batch of (x, t) collocation points
    H = 32           # num_hidden_nodes

    x = jax.random.uniform(kx, (N, 2), jnp.float32)   # (x, t) pairs in [0, 1)
    w1, b1, w2, b2 = init_fitter_params(kp, H)

    # Preferred path: keep the collocation points in SoA (2, N) layout so no
    # per-call HBM transpose is paid (transpose once, outside the kernel).
    x_t = jnp.asarray(x.T)
    z = jax.block_until_ready(fitter_forward_soa(x_t, w1, b1, w2, b2))

    # Reference, same math as torch: sigmoid(x @ W1.T + b1) @ W2.T + b2
    z_ref = jax.nn.sigmoid(x @ w1.T + b1) @ w2.T + b2
    assert z.shape == (N, 1)
    assert jnp.allclose(z, z_ref, atol=1e-5, rtol=1e-5)

    # Second check: ragged batch + non-8-aligned hidden size (exercises the
    # H padding and full-extent-block fallback) via the AoS wrapper.
    N2, H2 = 100, 20
    kx2, kp2 = jax.random.split(jax.random.PRNGKey(1))
    x2 = jax.random.uniform(kx2, (N2, 2), jnp.float32)
    w1b, b1b, w2b, b2b = init_fitter_params(kp2, H2)
    z2 = jax.block_until_ready(fitter_forward(x2, w1b, b1b, w2b, b2b))
    z2_ref = jax.nn.sigmoid(x2 @ w1b.T + b1b) @ w2b.T + b2b
    assert z2.shape == (N2, 1)
    assert jnp.allclose(z2, z2_ref, atol=1e-5, rtol=1e-5)

    print("KERNEL_OK")
</pallas_src>

<mosaic_0001>
module attributes {stable_mosaic.version = 11 : i64} {
  func.func @_fitter_kernel(%arg0: i32, %arg1: memref<2x128xf32, #tpu.memory_space<vmem>>, %arg2: memref<32x2xf32, #tpu.memory_space<vmem>>, %arg3: memref<32x1xf32, #tpu.memory_space<vmem>>, %arg4: memref<32x1xf32, #tpu.memory_space<vmem>>, %arg5: memref<1x1xf32, #tpu.memory_space<smem>>, %arg6: memref<1x128xf32, #tpu.memory_space<vmem>>) attributes {dimension_semantics = [#tpu.dimension_semantics<parallel>], iteration_bounds = array<i64: 2>, scalar_prefetch = 0 : i64, scratch_operands = 0 : i64, tpu.core_type = #tpu.core_type<tc>, window_params = [{transform_indices = @transform_0, window_bounds = array<i64: 2, 128>}, {pipeline_mode = #tpu.pipeline_mode<synchronous>, transform_indices = @transform_1, window_bounds = array<i64: 32, 2>}, {pipeline_mode = #tpu.pipeline_mode<synchronous>, transform_indices = @transform_2, window_bounds = array<i64: 32, 1>}, {pipeline_mode = #tpu.pipeline_mode<synchronous>, transform_indices = @transform_3, window_bounds = array<i64: 32, 1>}, {transform_indices = @transform_4, window_bounds = array<i64: 1, 1>}, {transform_indices = @transform_5, window_bounds = array<i64: 1, 128>}]} {
    %c0 = arith.constant 0 : index
    %c0_0 = arith.constant 0 : index
    %0 = vector.load %arg1[%c0, %c0_0] : memref<2x128xf32, #tpu.memory_space<vmem>>, vector<2x128xf32>
    %1 = vector.extract_strided_slice %0 {offsets = [0, 0], sizes = [1, 128], strides = [1, 1]} : vector<2x128xf32> to vector<1x128xf32>
    %2 = vector.extract_strided_slice %0 {offsets = [1, 0], sizes = [1, 128], strides = [1, 1]} : vector<2x128xf32> to vector<1x128xf32>
    %c0_1 = arith.constant 0 : index
    %c0_2 = arith.constant 0 : index
    %3 = vector.load %arg2[%c0_1, %c0_2] : memref<32x2xf32, #tpu.memory_space<vmem>>, vector<32x1xf32>
    %c0_3 = arith.constant 0 : index
    %c1 = arith.constant 1 : index
    %4 = vector.load %arg2[%c0_3, %c1] : memref<32x2xf32, #tpu.memory_space<vmem>>, vector<32x1xf32>
    %5 = vector.broadcast %3 : vector<32x1xf32> to vector<32x128xf32>
    %6 = vector.broadcast %1 : vector<1x128xf32> to vector<32x128xf32>
    %7 = arith.mulf %5, %6 : vector<32x128xf32>
    %8 = vector.broadcast %4 : vector<32x1xf32> to vector<32x128xf32>
    %9 = vector.broadcast %2 : vector<1x128xf32> to vector<32x128xf32>
    %10 = arith.mulf %8, %9 : vector<32x128xf32>
    %11 = arith.addf %7, %10 : vector<32x128xf32>
    %c0_4 = arith.constant 0 : index
    %c0_5 = arith.constant 0 : index
    %12 = vector.load %arg3[%c0_4, %c0_5] : memref<32x1xf32, #tpu.memory_space<vmem>>, vector<32x1xf32>
    %13 = vector.broadcast %12 : vector<32x1xf32> to vector<32x128xf32>
    %14 = arith.addf %11, %13 : vector<32x128xf32>
    %15 = math.tanh %14 : vector<32x128xf32>
    %c0_6 = arith.constant 0 : index
    %c0_7 = arith.constant 0 : index
    %16 = vector.load %arg4[%c0_6, %c0_7] : memref<32x1xf32, #tpu.memory_space<vmem>>, vector<32x1xf32>
    %17 = vector.broadcast %16 : vector<32x1xf32> to vector<32x128xf32>
    %18 = arith.mulf %15, %17 : vector<32x128xf32>
    %cst = arith.constant dense<0.000000e+00> : vector<128xf32>
    %19 = vector.multi_reduction <add>, %18, %cst [0] : vector<32x128xf32> to vector<128xf32>
    %20 = vector.shape_cast %19 : vector<128xf32> to vector<1x128xf32>
    %c0_8 = arith.constant 0 : index
    %c0_9 = arith.constant 0 : index
    %21 = memref.load %arg5[%c0_8, %c0_9] : memref<1x1xf32, #tpu.memory_space<smem>>
    %22 = vector.broadcast %21 : f32 to vector<1x128xf32>
    %23 = arith.addf %20, %22 : vector<1x128xf32>
    %c0_10 = arith.constant 0 : index
    %c0_11 = arith.constant 0 : index
    %24 = vector.load %arg6[%c0_10, %c0_11] : memref<1x128xf32, #tpu.memory_space<vmem>>, vector<1x128xf32>
    tpu.vector_store %arg6[%c0_10, %c0_11], %23 {strides = array<i32>} : memref<1x128xf32, #tpu.memory_space<vmem>>, vector<1x128xf32>,
    return
  }
  func.func @transform_0(%arg0: i32) -> (i32, i32) {
    %c0_i32 = arith.constant 0 : i32
    %c0_i32_0 = arith.constant 0 : i32
    return %c0_i32, %arg0 : i32, i32
  }
  func.func @transform_1(%arg0: i32) -> (i32, i32) {
    %c0_i32 = arith.constant 0 : i32
    %c0_i32_0 = arith.constant 0 : i32
    %c0_i32_1 = arith.constant 0 : i32
    return %c0_i32, %c0_i32_0 : i32, i32
  }
  func.func @transform_2(%arg0: i32) -> (i32, i32) {
    %c0_i32 = arith.constant 0 : i32
    %c0_i32_0 = arith.constant 0 : i32
    %c0_i32_1 = arith.constant 0 : i32
    return %c0_i32, %c0_i32_0 : i32, i32
  }
  func.func @transform_3(%arg0: i32) -> (i32, i32) {
    %c0_i32 = arith.constant 0 : i32
    %c0_i32_0 = arith.constant 0 : i32
    %c0_i32_1 = arith.constant 0 : i32
    return %c0_i32, %c0_i32_0 : i32, i32
  }
  func.func @transform_4(%arg0: i32) -> (i32, i32) {
    %c0_i32 = arith.constant 0 : i32
    %c0_i32_0 = arith.constant 0 : i32
    %c0_i32_1 = arith.constant 0 : i32
    return %c0_i32, %c0_i32_0 : i32, i32
  }
  func.func @transform_5(%arg0: i32) -> (i32, i32) {
    %c0_i32 = arith.constant 0 : i32
    %c0_i32_0 = arith.constant 0 : i32
    return %c0_i32, %arg0 : i32, i32
  }
}

</mosaic_0001>

<bundles_post_ra>
// kernel: tpu_custom_call.1
= control target key start
LH: loop header
LB: loop body
LE: loop exit
PB: predicated region body
PF: predicated region fallthrough
CT: control target
= control target key end

     0   :  { %s718_s0 = inlined_call_operand.vmem [shape: f32[2,256], index: 0, kind: input, shape index: {}]   ;;  %s719_s1 = inlined_call_operand.vmem [shape: f32[32,2], index: 1, kind: input, shape index: {}]   ;;  %s720_s2 = inlined_call_operand.vmem [shape: f32[32,1], index: 2, kind: input, shape index: {}]   ;;  %s721_s3 = inlined_call_operand.vmem [shape: f32[32,1], index: 3, kind: input, shape index: {}]   ;;  %s722_s4 = inlined_call_operand.<no memory space> [shape: f32[1,1], index: 4, kind: input, shape index: {}]   ;;  %s723_s5 = inlined_call_operand.hbm [shape: f32[1,256], index: 5, kind: output, shape index: {}]  }
   0x1   :  { %10 = sst [smem:[#allocation2]] %s722_s4 }
   0x2   :  { %11 = vsyncpa [#allocation4], 0 }
   0x3   :  { %13 = vsyncpa [#allocation4 + $0x1], 0  ;;  %s582_s20 = smov 0   ;;  %s584_s21 = smov 0  }
   0x4   :  { %s586_s22 = smov 0   ;;  %s588_s23 = smov 0  }
   0x5 LB: > { %s603_s4 = sadd.s32 4294967295, %s544_s23   ;;  %s422_s24 = sadd.s32 4294967294, %s544_s23   ;;  %s544_s23 = sphi %s588_s23, %s729_s23   ;;  %s540_s22 = sphi %s586_s22, %s728_s22   ;;  %s536_s21 = sphi %s584_s21, %s727_s21   ;;  %s532_s20 = sphi %s582_s20, %s726_s20  }
   0x6   : > { %s607_s25 = sadd.s32 1, %s544_s23   ;;  %s136_s26 = sadd.s32 1, %s540_s22 }
   0x7   : > { %s133_s27 = ssub.s32 %s544_s23, %s607_s25  ;;  %p146_p0 = scmp.ne.s32.totalorder %s540_s22, %s536_s21 }
   0x8   : > { %p134_p1 = scmp.eq.s32.totalorder %s133_s27, 0  ;;  %p147_p2 = scmp.eq.s32.totalorder %s603_s4, 1 }
   0x9   : > { %p152_p3 = scmp.ne.s32.totalorder %s536_s21, %s532_s20  ;;  %p153_p4 = scmp.eq.s32.totalorder %s422_s24, 1 }
   0xa   : > { %s618_s28 = scalar_select %p134_p1, %s540_s22, %s136_s26  }
   0xb   : > { %p620_p5 = por %p147_p2, %p146_p0  ;;  %p624_p6 = por %p153_p4, %p152_p3 }
   0xc   : > { %p425_p7 = scmp.ge.s32.totalorder %s544_s23, 1  ;;  %p190_p8 = scmp.lt.s32.totalorder %s544_s23, 3 }
   0xe   : > { %p191_p9 = pnand %p425_p7, %p190_p8 }
   0xf   : > { %v221_v0 = vld [vmem:[%s719_s1] sm:$0xff] (!%p191_p9)  ;;  %v546_v1 = vmov (!%p191_p9), 1   ;;  %v547_v2 = vmov (!%p191_p9), 0   ;;  %v222_v3 = vld [vmem:[%s719_s1 + $0x8] sm:$0xff] (!%p191_p9)  ;;  %v223_v4 = vld [vmem:[%s719_s1 + $0x10] sm:$0xff] (!%p191_p9)  ;;  %p216_p10 = scmp.lt.s32.totalorder (!%p191_p9), %s603_s4, 1  ;;  %v245_v14 = vlaneseq (!%p191_p9) }
  0x10   : > { %194 = sbr.rel (%p191_p9) target bundleno = 212 (0xd4), region = 40  ;;  %472 = vset.pattern.permute.xlu1 (!%p191_p9), %v546_v1  ;;  %471 = vset.pattern.permute.xlu0 (!%p191_p9), %v547_v2  ;;  %v224_v5 = vld [vmem:[%s719_s1 + $0x18] sm:$0xff] (!%p191_p9)  ;;  %v281_v6 = vld [vmem:[%s720_s2] sm:$0xff] (!%p191_p9)  ;;  %v282_v7 = vld [vmem:[%s720_s2 + $0x8] sm:$0xff] (!%p191_p9)  ;;  %s350_s18 = sld [smem:[#allocation2]] (!%p191_p9) }
  0x11   : > { %254 = vperm.xlu1 (!%p191_p9), %472, %v221_v0   ;;  %227 = vperm.xlu0 (!%p191_p9), %471, %v221_v0   ;;  %v283_v8 = vld [vmem:[%s720_s2 + $0x10] sm:$0xff] (!%p191_p9)  ;;  %v284_v9 = vld [vmem:[%s720_s2 + $0x18] sm:$0xff] (!%p191_p9)  ;;  %v313_v10 = vld [vmem:[%s721_s3] sm:$0xff] (!%p191_p9)  ;;  %v246_v15 = vshrl.u32 (!%p191_p9), %v245_v14, 7  ;;  %s214_s19 = sand.u32 (!%p191_p9), 1, %s536_s21   ;;  %s427_s24 = sshll.u32 (!%p191_p9), %s603_s4, 4 }
  0x12   : > { %v314_v11 = vld [vmem:[%s721_s3 + $0x8] sm:$0xff] (!%p191_p9)  ;;  %v315_v12 = vld [vmem:[%s721_s3 + $0x10] sm:$0xff] (!%p191_p9)  ;;  %v316_v13 = vld [vmem:[%s721_s3 + $0x18] sm:$0xff] (!%p191_p9)  ;;  %s215_s26 = scalar_lea.vmem (!%p191_p9), [#allocation3], %s214_s19  ;;  %s676_s8 = scalar_lea.hbm (!%p191_p9), %s723_s5, %s427_s24 }
  0x13   : > { %v271_v18 = vsub.s32 (!%p191_p9), 1, %v246_v15  ;;  %v247_v19 = vsub.s32 (!%p191_p9), 0, %v246_v15  ;;  %s367_s27 = sshll.u32 (!%p191_p9), %s215_s26, 4  ;;  %s355_s9 = scalar_lea.sflag (!%p191_p9), [#allocation4], %s214_s19  ;;  %s678_s27 = int_to_ptr.vmem [resolvable:$true] %s367_s27 }
  0x14   : > { %s482_s10 = scalar_lea.vmem (!%p191_p9), %s678_s27, 16 }
  0x15   : > { %258 = vperm.xlu1 (!%p191_p9), %472, %v222_v3   ;;  %232 = vperm.xlu0 (!%p191_p9), %471, %v222_v3   ;;  %p483_p11 = scmp.ne.s32.totalorder (!%p191_p9), %s678_s27, %s482_s10 }
  0x17   : > { %s217_s13 = scalar_select %p216_p10, %s603_s4, 1 }
  0x18   : > { %p484_p12 = pnand %p483_p11, %p620_p5  ;;  %s548_s4 = smov [#allocation3]  }
  0x19   : > { %262 = vperm.xlu1 %472, %v223_v4   ;;  %237 = vperm.xlu0 %471, %v223_v4   ;;  %s426_s14 = sshll.u32 %s217_s13, 1  ;;  %s486_s11 = sshll.u32 %s548_s4, 4  ;;  %s487_s11 = int_to_ptr.vmem [resolvable:$false] %s486_s11 }
  0x1a   : > { %s219_s17 = scalar_lea.vmem %s718_s0, %s426_s14  ;;  %p485_p13 = pneg %p484_p12 }
  0x1b   : > { %v220_v20 = vld [vmem:[%s219_s17] sm:$0x3]  ;;  %s488_s12 = scalar_lea.vmem %s487_s11, 32  ;;  %p489_p0 = scmp.lt.s32.totalorder %s678_s27, %s487_s11 }
  0x1c   : > { %v272_v23 = vrot.slane %v220_v20, %v271_v18  ;;  %v248_v24 = vrot.slane %v220_v20, %v247_v19  ;;  %p490_p1 = scmp.lt.s32.totalorder %s488_s12, %s482_s10 }
  0x1d   : > { %266 = vperm.xlu1 %472, %v224_v5   ;;  %242 = vperm.xlu0 %471, %v224_v5   ;;  %v351_v5 = vstv %s350_s18 }
  0x1e   : > { %p491_p2 = por %p490_p1, %p489_p0 }
  0x20   : > { %p492_p3 = pnand %p491_p2, %p485_p13 }
  0x21   : > { %473 = vset.pattern.permute.xlu1 %v547_v2  ;;  %287 = vperm.xlu0 %471, %v281_v6  }
  0x22   : > { %292 = vperm.xlu1 %473, %v282_v7  }
  0x25   : > { %297 = vperm.xlu0 %471, %v283_v8  }
  0x26   : > { %302 = vperm.xlu1 %473, %v284_v9  }
  0x29   : > { %319 = vperm.xlu0 %471, %v313_v10  }
  0x2a   : > { %324 = vperm.xlu1 %473, %v314_v11  }
  0x2d   : > { %329 = vperm.xlu0 %471, %v315_v12  }
  0x2e   : > { %334 = vperm.xlu1 %473, %v316_v13  }
  0x90   : > { %v255_v16 = vpop.permute.xlu1 %254  ;;  %v228_v17 = vpop.permute.xlu0 %227 }
  0x91   : > { %v273_v27 = vmul.f32 %v272_v23, %v255_v16  ;;  %v249_v28 = vmul.f32 %v248_v24, %v228_v17 }
  0x93   : > { %v277_v35 = vadd.f32 %v273_v27, %v249_v28 }
  0x94   : > { %v259_v21 = vpop.permute.xlu1 %258  ;;  %v233_v22 = vpop.permute.xlu0 %232 }
  0x95   : > { %v274_v29 = vmul.f32 %v272_v23, %v259_v21  ;;  %v250_v30 = vmul.f32 %v248_v24, %v233_v22 }
  0x97   : > { %v278_v39 = vadd.f32 %v274_v29, %v250_v30 }
  0x98   : > { %v263_v25 = vpop.permute.xlu1 %262  ;;  %v238_v26 = vpop.permute.xlu0 %237 }
  0x99   : > { %v275_v33 = vmul.f32 %v272_v23, %v263_v25  ;;  %v251_v34 = vmul.f32 %v248_v24, %v238_v26 }
  0x9b   : > { %v279_v43 = vadd.f32 %v275_v33, %v251_v34 }
  0x9c   : > { %v267_v31 = vpop.permute.xlu1 %266  ;;  %v243_v32 = vpop.permute.xlu0 %242 }
  0x9d   : > { %v276_v36 = vmul.f32 %v272_v23, %v267_v31  ;;  %v252_v37 = vmul.f32 %v248_v24, %v243_v32 }
  0x9f   : > { %v280_v45 = vadd.f32 %v276_v36, %v252_v37 }
  0xa0   : > { %v288_v38 = vpop.permute.xlu0 %287 }
  0xa1   : > { %v305_v40 = vadd.f32 %v288_v38, %v277_v35  ;;  %v293_v41 = vpop.permute.xlu1 %292 }
  0xa2   : > { %v306_v42 = vadd.f32 %v293_v41, %v278_v39 }
  0xa3   : > { %474 = vtanh.f32 %v305_v40 }
  0xa4   : > { %476 = vtanh.f32 %v306_v42  ;;  %v298_v44 = vpop.permute.xlu0 %297 }
  0xa5   : > { %v307_v46 = vadd.f32 %v298_v44, %v279_v43  ;;  %v303_v47 = vpop.permute.xlu1 %302 }
  0xa6   : > { %v308_v48 = vadd.f32 %v303_v47, %v280_v45 }
  0xa7   : > { %478 = vtanh.f32 %v307_v46 }
  0xa8   : > { %480 = vtanh.f32 %v308_v48  ;;  %v320_v49 = vpop.permute.xlu0 %319 }
  0xa9   : > { %v325_v50 = vpop.permute.xlu1 %324 }
  0xac   : > { %v330_v57 = vpop.permute.xlu0 %329 }
  0xad   : > { %v475_v51 = vpop.eup %474  ;;  %v335_v60 = vpop.permute.xlu1 %334 }
  0xae   : > { %v477_v52 = vpop.eup %476  ;;  %v337_v53 = vmul.f32 %v475_v51, %v320_v49 }
  0xaf   : > { %v338_v54 = vmul.f32 %v477_v52, %v325_v50 }
  0xb1   : > { %v479_v55 = vpop.eup %478  ;;  %v341_v56 = vadd.f32 %v338_v54, %v337_v53 }
  0xb2   : > { %v481_v58 = vpop.eup %480  ;;  %v339_v59 = vmul.f32 %v479_v55, %v330_v57 }
  0xb3   : > { %v340_v61 = vmul.f32 %v481_v58, %v335_v60 }
  0xb4   : > { %v342_v62 = vadd.f32 %v341_v56, %v339_v59 }
  0xb6   : > { %v343_v63 = vadd.f32 %v342_v62, %v340_v61 }
  0xb8   : > { %v344_v0 = vrot.slane %v343_v63, 4 }
  0xba   : > { %v345_v1 = vadd.f32 %v344_v0, %v343_v63 }
  0xbc   : > { %v346_v2 = vrot.slane %v345_v1, 2 }
  0xbe   : > { %v347_v3 = vadd.f32 %v346_v2, %v345_v1 }
  0xc0   : > { %v348_v4 = vrot.slane %v347_v3, 1 }
  0xc2   : > { %v349_v6 = vadd.f32 %v348_v4, %v347_v3 }
  0xc4   : > { %v352_v7 = vadd.f32 %v351_v5, %v349_v6 }
  0xc6   : > { %353 = vst [vmem:[%s215_s26] sm:$0x1] %v352_v7 }
  0xc7   : > { %495 = shalt.err (!%p492_p3)
}
  0xc8   : > { %s496_s13 = scalar_lea.hbm %s676_s8, 16  ;;  %s500_s16 = scalar_lea.hbm %s723_s5, 32 }
  0xc9   : > { %p497_p4 = scmp.ne.s32.totalorder %s676_s8, %s496_s13  ;;  %p501_p9 = scmp.lt.u32.totalorder %s676_s8, %s723_s5 }
  0xca   : > { %p502_p10 = scmp.lt.u32.totalorder %s500_s16, %s496_s13  ;;  %p504_p12 = scmp.lt.u32.totalorder %s496_s13, %s676_s8 }
  0xcb   : > { %p498_p7 = pnand %p497_p4, %p620_p5 }
  0xcc   : > { %p503_p11 = por %p502_p10, %p501_p9 }
  0xcd   : > { %p499_p8 = pneg %p498_p7 }
  0xce   : > { %p505_p13 = por %p504_p12, %p503_p11 }
  0xd0   : > { %p506_p0 = pnand %p505_p13, %p499_p8 }
  0xd2   : > { %509 = shalt.err (!%p506_p0)
}
  0xd3   : > { %430 = dma.vmem_to_hbm [thread:$0]  (%p620_p5), %s678_s27, 16, %s676_s8, %s355_s9  }
  0xd4 PF: > { %p436_p1 = scmp.ge.s32.totalorder %s544_s23, 2  ;;  %s379_s19 = sand.u32 1, %s532_s20  }
  0xd5   : > { %s380_s24 = scalar_lea.sflag [#allocation4], %s379_s19 }
  0xd6   : > { %p433_p2 = pnand %p436_p1, %p624_p6 }
  0xd8   : > { %527 = dma.done.wait (!%p433_p2), %s380_s24, 16  }
  0xd9   : > { %529 = vsyncadd (!%p433_p2), %s380_s24, 4294967280  ;;  %p16_p3 = scmp.ge.s32.totalorder %s607_s25, 4   ;;  %s726_s20 = smov %s536_s21 }
  0xda   : > { %s727_s21 = smov %s540_s22  ;;  %s728_s22 = smov %s618_s28 }
  0xdb   : > { %s729_s23 = smov %s607_s25  ;;  %18 = sbr.rel (!%p16_p3) target bundleno = 5 (0x5), region = 75 }
  0xe2   :  { %384 = vsyncpa [#allocation4], 1 }
  0xe3   :  { %386 = vsyncpa [#allocation4 + $0x1], 1 }

</bundles_post_ra>
